<compile_context>
chip_gen: v7x
topology: tpu7x:2x2x1
jax: 0.10.0
libtpu: 0.0.40
codegen_flags: <defaults>
</compile_context>

<pallas_src>
import functools

import jax
import jax.numpy as jnp
from jax.experimental import pallas as pl
from jax.experimental.pallas import tpu as pltpu

_LANE = 128      # vreg lane width   (last dim)
_SUBLANE = 8     # vreg sublane rows (second-to-last dim)


def _round_up(x: int, m: int) -> int:
    return ((x + m - 1) // m) * m


def _pad2d(a, rows: int, cols: int):
    r, c = a.shape
    if r == rows and c == cols:
        return a
    return jnp.pad(a, ((0, rows - r), (0, cols - c)))


def make_mlp_kernel(num_layers: int, has_dense: bool):
    """Fused MLP: (num_layers-1) x [Linear + ReLU] followed by Linear.

    Ref order: rep, [dense], w0_rep, [w0_dense], b0, (w1, b1), ..., out.
    All feature dims are pre-padded to multiples of 128 with zeros.
    """

    def kernel(*refs):
        o_ref = refs[-1]
        idx = 0
        rep = refs[idx][...]; idx += 1
        if has_dense:
            dense = refs[idx][...]; idx += 1

        # ---- first layer: concat fused as a split matmul ----
        w0 = refs[idx][...]; idx += 1
        acc = jnp.dot(rep, w0, preferred_element_type=jnp.float32)
        if has_dense:
            w0d = refs[idx][...]; idx += 1
            acc = acc + jnp.dot(dense, w0d, preferred_element_type=jnp.float32)
        b0 = refs[idx][...]; idx += 1                # (1, H0) -> broadcasts
        h = acc + b0.astype(jnp.float32)
        if num_layers > 1:
            h = jnp.maximum(h, 0.0)                  # ReLU

        # ---- remaining layers ----
        for li in range(1, num_layers):
            w = refs[idx][...]; idx += 1
            b = refs[idx][...]; idx += 1
            h = jnp.dot(h.astype(w.dtype), w, preferred_element_type=jnp.float32)
            h = h + b.astype(jnp.float32)
            if li < num_layers - 1:
                h = jnp.maximum(h, 0.0)

        o_ref[...] = h.astype(o_ref.dtype)

    return kernel


def init_mlp_params(key, in_dim, out_dim, hidden_dims, bias=True,
                    dtype=jnp.float32):
    """Deterministic PyTorch-style init: U(-1/sqrt(fan_in), 1/sqrt(fan_in)).

    Weights stored transposed as [in_features, out_features] so y = x @ W + b.
    """
    dims = [in_dim] + list(hidden_dims or []) + [out_dim]
    params = []
    for li in range(len(dims) - 1):
        fan_in, fan_out = dims[li], dims[li + 1]
        key, kw, kb = jax.random.split(key, 3)
        bound = 1.0 / jnp.sqrt(jnp.asarray(fan_in, dtype))
        w = jax.random.uniform(kw, (fan_in, fan_out), dtype, -bound, bound)
        if bias:
            b = jax.random.uniform(kb, (fan_out,), dtype, -bound, bound)
        else:
            b = jnp.zeros((fan_out,), dtype)
        params.append((w, b))
    return params


@jax.jit
def mlp_decoder(representation, dense, params):
    """Forward pass of MLPDecoder (optional concat + MLP) as one fused kernel.

    representation: [B, D_rep]; dense: [B, D_dense] or None;
    params: list of (W [in, out], b [out]).
    """
    B, d_rep = representation.shape
    has_dense = dense is not None
    d_dense = dense.shape[1] if has_dense else 0
    num_layers = len(params)
    out_dim = params[-1][0].shape[1]
    out_dtype = representation.dtype

    # ---- batch tiling: one big tile for small B, 256-row tiles otherwise ----
    tb = min(_round_up(B, _SUBLANE), 256)
    B_pad = _round_up(B, tb)
    grid = (B_pad // tb,)

    # ---- lane-pad feature dims to multiples of 128 ----
    d_rep_p = _round_up(d_rep, _LANE)
    d_dense_p = _round_up(d_dense, _LANE) if has_dense else 0
    dims_p = [_round_up(params[li][0].shape[1], _LANE) for li in range(num_layers)]
    out_dim_p = dims_p[-1]

    inputs = [jnp.pad(representation, ((0, B_pad - B), (0, d_rep_p - d_rep)))]
    in_specs = [pl.BlockSpec((tb, d_rep_p), lambda i: (i, 0))]
    if has_dense:
        inputs.append(jnp.pad(dense, ((0, B_pad - B), (0, d_dense_p - d_dense))))
        in_specs.append(pl.BlockSpec((tb, d_dense_p), lambda i: (i, 0)))

    # ---- weights / biases: zero-padded, full blocks with constant index maps
    #      (fetched into VMEM once, revisited across batch tiles).  For very
    #      large hidden dims (v7x: 64 MiB VMEM) K-tile these instead. ----
    flat = []
    w0, b0 = params[0]
    if has_dense:
        # fuse torch.cat([rep, dense], 1) by splitting the first-layer weight.
        w0_rep = _pad2d(w0[:d_rep, :], d_rep_p, dims_p[0])
        w0_den = _pad2d(w0[d_rep:, :], d_dense_p, dims_p[0])
        flat += [w0_rep, w0_den]
        in_specs += [pl.BlockSpec(w0_rep.shape, lambda i: (0, 0)),
                     pl.BlockSpec(w0_den.shape, lambda i: (0, 0))]
    else:
        w0_rep = _pad2d(w0, d_rep_p, dims_p[0])
        flat.append(w0_rep)
        in_specs.append(pl.BlockSpec(w0_rep.shape, lambda i: (0, 0)))
    b0_p = _pad2d(b0.reshape(1, -1), 1, dims_p[0])
    flat.append(b0_p)
    in_specs.append(pl.BlockSpec(b0_p.shape, lambda i: (0, 0)))

    for li in range(1, num_layers):
        w, b = params[li]
        w_p = _pad2d(w, dims_p[li - 1], dims_p[li])
        b_p = _pad2d(b.reshape(1, -1), 1, dims_p[li])
        flat += [w_p, b_p]
        in_specs += [pl.BlockSpec(w_p.shape, lambda i: (0, 0)),
                     pl.BlockSpec(b_p.shape, lambda i: (0, 0))]

    kernel = make_mlp_kernel(num_layers, has_dense)

    out = pl.pallas_call(
        kernel,
        out_shape=jax.ShapeDtypeStruct((B_pad, out_dim_p), out_dtype),
        grid=grid,
        in_specs=in_specs,
        out_specs=pl.BlockSpec((tb, out_dim_p), lambda i: (i, 0)),
        compiler_params=pltpu.CompilerParams(
            dimension_semantics=("parallel",)),
    )(*inputs, *flat)

    return out[:B, :out_dim]


def mlp_decoder_ref(representation, dense, params):
    """Pure-JAX reference for correctness check."""
    x = representation if dense is None else jnp.concatenate(
        [representation, dense], axis=1)
    num_layers = len(params)
    for li, (w, b) in enumerate(params):
        x = x @ w + b
        if li < num_layers - 1:
            x = jnp.maximum(x, 0.0)
    return x


if __name__ == "__main__":
    # Shapes consistent with the module's forward:
    #   representation [B, 24], dense [B, 8]  ->  concat gives in_dim = 32
    #   hidden_dims = [64, 32], out_dim = 16, bias = True
    B = 16
    rep_dim, dense_dim = 24, 8
    in_dim = rep_dim + dense_dim
    hidden_dims = [64, 32]
    out_dim = 16

    key = jax.random.PRNGKey(0)
    k_rep, k_dense, k_params, k_params2 = jax.random.split(key, 4)

    representation = jax.random.normal(k_rep, (B, rep_dim), jnp.float32)
    dense = jax.random.normal(k_dense, (B, dense_dim), jnp.float32)
    params = init_mlp_params(k_params, in_dim, out_dim, hidden_dims, bias=True)

    # --- with dense (concat fused into the kernel) ---
    out = jax.block_until_ready(mlp_decoder(representation, dense, params))
    ref = mlp_decoder_ref(representation, dense, params)
    assert out.shape == (B, out_dim), out.shape
    # Tolerance covers MXU default-precision rounding: the kernel's padded /
    # split first-layer matmul accumulates in a different order than the
    # XLA reference dot.
    assert jnp.allclose(out, ref, atol=2e-2, rtol=2e-2), \
        float(jnp.max(jnp.abs(out - ref)))

    # --- without dense (dense=None path) ---
    params_nd = init_mlp_params(k_params2, rep_dim, out_dim, hidden_dims,
                                bias=True)
    out2 = jax.block_until_ready(mlp_decoder(representation, None, params_nd))
    ref2 = mlp_decoder_ref(representation, None, params_nd)
    assert out2.shape == (B, out_dim), out2.shape
    assert jnp.allclose(out2, ref2, atol=2e-2, rtol=2e-2), \
        float(jnp.max(jnp.abs(out2 - ref2)))

    print("KERNEL_OK")
</pallas_src>

<mosaic_0001>
module attributes {stable_mosaic.version = 11 : i64} {
  func.func @kernel(%arg0: i32, %arg1: memref<16x128xf32, #tpu.memory_space<vmem>>, %arg2: memref<16x128xf32, #tpu.memory_space<vmem>>, %arg3: memref<128x128xf32, #tpu.memory_space<vmem>>, %arg4: memref<128x128xf32, #tpu.memory_space<vmem>>, %arg5: memref<1x128xf32, #tpu.memory_space<vmem>>, %arg6: memref<128x128xf32, #tpu.memory_space<vmem>>, %arg7: memref<1x128xf32, #tpu.memory_space<vmem>>, %arg8: memref<128x128xf32, #tpu.memory_space<vmem>>, %arg9: memref<1x128xf32, #tpu.memory_space<vmem>>, %arg10: memref<16x128xf32, #tpu.memory_space<vmem>>) attributes {dimension_semantics = [#tpu.dimension_semantics<parallel>], iteration_bounds = array<i64: 1>, scalar_prefetch = 0 : i64, scratch_operands = 0 : i64, tpu.core_type = #tpu.core_type<tc>, window_params = [{transform_indices = @transform_0, window_bounds = array<i64: 16, 128>}, {transform_indices = @transform_1, window_bounds = array<i64: 16, 128>}, {pipeline_mode = #tpu.pipeline_mode<synchronous>, transform_indices = @transform_2, window_bounds = array<i64: 128, 128>}, {pipeline_mode = #tpu.pipeline_mode<synchronous>, transform_indices = @transform_3, window_bounds = array<i64: 128, 128>}, {pipeline_mode = #tpu.pipeline_mode<synchronous>, transform_indices = @transform_4, window_bounds = array<i64: 1, 128>}, {pipeline_mode = #tpu.pipeline_mode<synchronous>, transform_indices = @transform_5, window_bounds = array<i64: 128, 128>}, {pipeline_mode = #tpu.pipeline_mode<synchronous>, transform_indices = @transform_6, window_bounds = array<i64: 1, 128>}, {pipeline_mode = #tpu.pipeline_mode<synchronous>, transform_indices = @transform_7, window_bounds = array<i64: 128, 128>}, {pipeline_mode = #tpu.pipeline_mode<synchronous>, transform_indices = @transform_8, window_bounds = array<i64: 1, 128>}, {transform_indices = @transform_9, window_bounds = array<i64: 16, 128>}]} {
    %c0 = arith.constant 0 : index
    %c0_0 = arith.constant 0 : index
    %0 = vector.load %arg1[%c0, %c0_0] : memref<16x128xf32, #tpu.memory_space<vmem>>, vector<16x128xf32>
    %c0_1 = arith.constant 0 : index
    %c0_2 = arith.constant 0 : index
    %1 = vector.load %arg2[%c0_1, %c0_2] : memref<16x128xf32, #tpu.memory_space<vmem>>, vector<16x128xf32>
    %c0_3 = arith.constant 0 : index
    %c0_4 = arith.constant 0 : index
    %2 = vector.load %arg3[%c0_3, %c0_4] : memref<128x128xf32, #tpu.memory_space<vmem>>, vector<128x128xf32>
    %cst = arith.constant dense<0.000000e+00> : vector<16x128xf32>
    %3 = tpu.matmul %0, %2, %cst {dimension_numbers = #tpu.dot_dimension_numbers<[1], [0], [0], [1], [0, 0, 1, 1], [], []>} : vector<16x128xf32>, vector<128x128xf32>, vector<16x128xf32> -> vector<16x128xf32>
    %c0_5 = arith.constant 0 : index
    %c0_6 = arith.constant 0 : index
    %4 = vector.load %arg4[%c0_5, %c0_6] : memref<128x128xf32, #tpu.memory_space<vmem>>, vector<128x128xf32>
    %cst_7 = arith.constant dense<0.000000e+00> : vector<16x128xf32>
    %5 = tpu.matmul %1, %4, %cst_7 {dimension_numbers = #tpu.dot_dimension_numbers<[1], [0], [0], [1], [0, 0, 1, 1], [], []>} : vector<16x128xf32>, vector<128x128xf32>, vector<16x128xf32> -> vector<16x128xf32>
    %6 = arith.addf %3, %5 : vector<16x128xf32>
    %c0_8 = arith.constant 0 : index
    %c0_9 = arith.constant 0 : index
    %7 = vector.load %arg5[%c0_8, %c0_9] : memref<1x128xf32, #tpu.memory_space<vmem>>, vector<1x128xf32>
    %8 = vector.broadcast %7 : vector<1x128xf32> to vector<16x128xf32>
    %9 = arith.addf %6, %8 : vector<16x128xf32>
    %cst_10 = arith.constant 0.000000e+00 : f32
    %10 = vector.broadcast %cst_10 : f32 to vector<16x128xf32>
    %11 = arith.maximumf %9, %10 : vector<16x128xf32>
    %c0_11 = arith.constant 0 : index
    %c0_12 = arith.constant 0 : index
    %12 = vector.load %arg6[%c0_11, %c0_12] : memref<128x128xf32, #tpu.memory_space<vmem>>, vector<128x128xf32>
    %c0_13 = arith.constant 0 : index
    %c0_14 = arith.constant 0 : index
    %13 = vector.load %arg7[%c0_13, %c0_14] : memref<1x128xf32, #tpu.memory_space<vmem>>, vector<1x128xf32>
    %cst_15 = arith.constant dense<0.000000e+00> : vector<16x128xf32>
    %14 = tpu.matmul %11, %12, %cst_15 {dimension_numbers = #tpu.dot_dimension_numbers<[1], [0], [0], [1], [0, 0, 1, 1], [], []>} : vector<16x128xf32>, vector<128x128xf32>, vector<16x128xf32> -> vector<16x128xf32>
    %15 = vector.broadcast %13 : vector<1x128xf32> to vector<16x128xf32>
    %16 = arith.addf %14, %15 : vector<16x128xf32>
    %cst_16 = arith.constant 0.000000e+00 : f32
    %17 = vector.broadcast %cst_16 : f32 to vector<16x128xf32>
    %18 = arith.maximumf %16, %17 : vector<16x128xf32>
    %c0_17 = arith.constant 0 : index
    %c0_18 = arith.constant 0 : index
    %19 = vector.load %arg8[%c0_17, %c0_18] : memref<128x128xf32, #tpu.memory_space<vmem>>, vector<128x128xf32>
    %c0_19 = arith.constant 0 : index
    %c0_20 = arith.constant 0 : index
    %20 = vector.load %arg9[%c0_19, %c0_20] : memref<1x128xf32, #tpu.memory_space<vmem>>, vector<1x128xf32>
    %cst_21 = arith.constant dense<0.000000e+00> : vector<16x128xf32>
    %21 = tpu.matmul %18, %19, %cst_21 {dimension_numbers = #tpu.dot_dimension_numbers<[1], [0], [0], [1], [0, 0, 1, 1], [], []>} : vector<16x128xf32>, vector<128x128xf32>, vector<16x128xf32> -> vector<16x128xf32>
    %22 = vector.broadcast %20 : vector<1x128xf32> to vector<16x128xf32>
    %23 = arith.addf %21, %22 : vector<16x128xf32>
    %c0_22 = arith.constant 0 : index
    %c0_23 = arith.constant 0 : index
    %24 = vector.load %arg10[%c0_22, %c0_23] : memref<16x128xf32, #tpu.memory_space<vmem>>, vector<16x128xf32>
    tpu.vector_store %arg10[%c0_22, %c0_23], %23 {strides = array<i32>} : memref<16x128xf32, #tpu.memory_space<vmem>>, vector<16x128xf32>,
    return
  }
  func.func @transform_0(%arg0: i32) -> (i32, i32) {
    %c0_i32 = arith.constant 0 : i32
    %c0_i32_0 = arith.constant 0 : i32
    return %arg0, %c0_i32 : i32, i32
  }
  func.func @transform_1(%arg0: i32) -> (i32, i32) {
    %c0_i32 = arith.constant 0 : i32
    %c0_i32_0 = arith.constant 0 : i32
    return %arg0, %c0_i32 : i32, i32
  }
  func.func @transform_2(%arg0: i32) -> (i32, i32) {
    %c0_i32 = arith.constant 0 : i32
    %c0_i32_0 = arith.constant 0 : i32
    %c0_i32_1 = arith.constant 0 : i32
    return %c0_i32, %c0_i32_0 : i32, i32
  }
  func.func @transform_3(%arg0: i32) -> (i32, i32) {
    %c0_i32 = arith.constant 0 : i32
    %c0_i32_0 = arith.constant 0 : i32
    %c0_i32_1 = arith.constant 0 : i32
    return %c0_i32, %c0_i32_0 : i32, i32
  }
  func.func @transform_4(%arg0: i32) -> (i32, i32) {
    %c0_i32 = arith.constant 0 : i32
    %c0_i32_0 = arith.constant 0 : i32
    %c0_i32_1 = arith.constant 0 : i32
    return %c0_i32, %c0_i32_0 : i32, i32
  }
  func.func @transform_5(%arg0: i32) -> (i32, i32) {
    %c0_i32 = arith.constant 0 : i32
    %c0_i32_0 = arith.constant 0 : i32
    %c0_i32_1 = arith.constant 0 : i32
    return %c0_i32, %c0_i32_0 : i32, i32
  }
  func.func @transform_6(%arg0: i32) -> (i32, i32) {
    %c0_i32 = arith.constant 0 : i32
    %c0_i32_0 = arith.constant 0 : i32
    %c0_i32_1 = arith.constant 0 : i32
    return %c0_i32, %c0_i32_0 : i32, i32
  }
  func.func @transform_7(%arg0: i32) -> (i32, i32) {
    %c0_i32 = arith.constant 0 : i32
    %c0_i32_0 = arith.constant 0 : i32
    %c0_i32_1 = arith.constant 0 : i32
    return %c0_i32, %c0_i32_0 : i32, i32
  }
  func.func @transform_8(%arg0: i32) -> (i32, i32) {
    %c0_i32 = arith.constant 0 : i32
    %c0_i32_0 = arith.constant 0 : i32
    %c0_i32_1 = arith.constant 0 : i32
    return %c0_i32, %c0_i32_0 : i32, i32
  }
  func.func @transform_9(%arg0: i32) -> (i32, i32) {
    %c0_i32 = arith.constant 0 : i32
    %c0_i32_0 = arith.constant 0 : i32
    return %arg0, %c0_i32 : i32, i32
  }
}

</mosaic_0001>

<bundles_post_ra>
// kernel: mlp_decoder.1
= control target key start
LH: loop header
LB: loop body
LE: loop exit
PB: predicated region body
PF: predicated region fallthrough
CT: control target
= control target key end

     0   :  { %s1096_s0 = inlined_call_operand.vmem [shape: f32[16,128], index: 0, kind: input, shape index: {}]   ;;  %s1097_s1 = inlined_call_operand.vmem [shape: f32[16,128], index: 1, kind: input, shape index: {}]   ;;  %s1098_s2 = inlined_call_operand.vmem [shape: f32[128,128], index: 2, kind: input, shape index: {}]   ;;  %s1099_s3 = inlined_call_operand.vmem [shape: f32[128,128], index: 3, kind: input, shape index: {}]   ;;  %s1100_s4 = inlined_call_operand.vmem [shape: f32[1,128], index: 4, kind: input, shape index: {}]   ;;  %s1101_s5 = inlined_call_operand.vmem [shape: f32[128,128], index: 5, kind: input, shape index: {}]   ;;  %s1102_s6 = inlined_call_operand.vmem [shape: f32[1,128], index: 6, kind: input, shape index: {}]   ;;  %s1103_s7 = inlined_call_operand.vmem [shape: f32[128,128], index: 7, kind: input, shape index: {}]   ;;  %s1104_s8 = inlined_call_operand.vmem [shape: f32[1,128], index: 8, kind: input, shape index: {}]   ;;  %s1105_s9 = inlined_call_operand.hbm [shape: f32[16,128], index: 9, kind: output, shape index: {}]  }
   0x1   :  { %v53_v0 = vld [vmem:[%s1099_s3] sm:$0xff]  ;;  %v54_v1 = vld [vmem:[%s1099_s3 + $0x8] sm:$0xff]  ;;  %v55_v2 = vld [vmem:[%s1099_s3 + $0x10] sm:$0xff] }
   0x2   :  { %v661_v3 = vpack.c.bf16 %v54_v1, %v53_v0  ;;  %v56_v4 = vld [vmem:[%s1099_s3 + $0x18] sm:$0xff]  ;;  %v57_v6 = vld [vmem:[%s1099_s3 + $0x20] sm:$0xff]  ;;  %v58_v7 = vld [vmem:[%s1099_s3 + $0x28] sm:$0xff] }
   0x3   :  { %v665_v5 = vpack.c.bf16 %v56_v4, %v55_v2  ;;  %v669_v8 = vpack.c.bf16 %v58_v7, %v57_v6  ;;  %v35_v9 = vld [vmem:[%s1097_s1] sm:$0xff]  ;;  %v59_v10 = vld [vmem:[%s1099_s3 + $0x30] sm:$0xff]  ;;  %v60_v11 = vld [vmem:[%s1099_s3 + $0x38] sm:$0xff] }
   0x4   :  { %662 = vmatprep.subr.bf16.mxu0 %v661_v3  ;;  %553 = vmatprep.mubr.f32.mxu0 %v35_v9  ;;  %v673_v12 = vpack.c.bf16 %v60_v11, %v59_v10  ;;  %v61_v13 = vld [vmem:[%s1099_s3 + $0x40] sm:$0xff]  ;;  %v62_v14 = vld [vmem:[%s1099_s3 + $0x48] sm:$0xff]  ;;  %v232_v17 = vld [vmem:[%s1101_s5 + $0x10] sm:$0xff] }
   0x5   :  { %664 = vmatpush3.bf16.msra.mxu0 %v661_v3  ;;  %v230_v15 = vld [vmem:[%s1101_s5] sm:$0xff]  ;;  %v231_v16 = vld [vmem:[%s1101_s5 + $0x8] sm:$0xff]  ;;  %v677_v18 = vpack.c.bf16 %v62_v14, %v61_v13  ;;  %v63_v19 = vld [vmem:[%s1099_s3 + $0x50] sm:$0xff] }
   0x6   :  { %666 = vmatprep.subr.bf16.mxu0 %v665_v5  ;;  %v725_v20 = vpack.c.bf16 %v231_v16, %v230_v15  ;;  %v233_v21 = vld [vmem:[%s1101_s5 + $0x18] sm:$0xff]  ;;  %v234_v24 = vld [vmem:[%s1101_s5 + $0x20] sm:$0xff]  ;;  %v235_v25 = vld [vmem:[%s1101_s5 + $0x28] sm:$0xff] }
   0x7   :  { %v64_v22 = vld [vmem:[%s1099_s3 + $0x58] sm:$0xff]  ;;  %v729_v23 = vpack.c.bf16 %v233_v21, %v232_v17 }
   0x8   :  { %726 = vmatprep.subr.bf16.mxu1 %v725_v20 }
   0x9   :  { %668 = vmatpush3.bf16.msra.mxu0 %v665_v5  ;;  %728 = vmatpush3.bf16.msra.mxu1 %v725_v20 }
   0xa   :  { %670 = vmatprep.subr.bf16.mxu0 %v669_v8 }
   0xd   :  { %672 = vmatpush3.bf16.msra.mxu0 %v669_v8 }
   0xe   :  { %674 = vmatprep.subr.bf16.mxu0 %v673_v12 }
  0x11   :  { %676 = vmatpush3.bf16.msra.mxu0 %v673_v12 }
  0x12   :  { %14 = vsyncpa [#allocation3], 0  ;;  %678 = vmatprep.subr.bf16.mxu0 %v677_v18  ;;  %v681_v26 = vpack.c.bf16 %v64_v22, %v63_v19  ;;  %v65_v27 = vld [vmem:[%s1099_s3 + $0x60] sm:$0xff]  ;;  %730 = vmatprep.subr.bf16.mxu1 %v729_v23  ;;  %v733_v28 = vpack.c.bf16 %v235_v25, %v234_v24  ;;  %v66_v29 = vld [vmem:[%s1099_s3 + $0x68] sm:$0xff] }
  0x13   :  { %v236_v30 = vld [vmem:[%s1101_s5 + $0x30] sm:$0xff]  ;;  %v237_v31 = vld [vmem:[%s1101_s5 + $0x38] sm:$0xff]  ;;  %732 = vmatpush3.bf16.msra.mxu1 %v729_v23  ;;  %v685_v32 = vpack.c.bf16 %v66_v29, %v65_v27  ;;  %v238_v36 = vld [vmem:[%s1101_s5 + $0x40] sm:$0xff] }
  0x14   :  { %v67_v33 = vld [vmem:[%s1099_s3 + $0x70] sm:$0xff]  ;;  %734 = vmatprep.subr.bf16.mxu1 %v733_v28  ;;  %v737_v34 = vpack.c.bf16 %v237_v31, %v236_v30  ;;  %v68_v35 = vld [vmem:[%s1099_s3 + $0x78] sm:$0xff]  ;;  %v239_v37 = vld [vmem:[%s1101_s5 + $0x48] sm:$0xff] }
  0x15   :  { %680 = vmatpush3.bf16.msra.mxu0 %v677_v18  ;;  %v689_v38 = vpack.c.bf16 %v68_v35, %v67_v33  ;;  %v37_v39 = vld [vmem:[%s1098_s2] sm:$0xff]  ;;  %v741_v40 = vpack.c.bf16 %v239_v37, %v238_v36  ;;  %v38_v41 = vld [vmem:[%s1098_s2 + $0x8] sm:$0xff]  ;;  %v240_v42 = vld [vmem:[%s1101_s5 + $0x50] sm:$0xff] }
  0x16   :  { %682 = vmatprep.subr.bf16.mxu0 %v681_v26  ;;  %v241_v43 = vld [vmem:[%s1101_s5 + $0x58] sm:$0xff]  ;;  %v693_v44 = vpack.c.bf16 %v38_v41, %v37_v39  ;;  %v39_v46 = vld [vmem:[%s1098_s2 + $0x10] sm:$0xff]  ;;  %v242_v48 = vld [vmem:[%s1101_s5 + $0x60] sm:$0xff] }
  0x17   :  { %736 = vmatpush3.bf16.msra.mxu1 %v733_v28  ;;  %v745_v45 = vpack.c.bf16 %v241_v43, %v240_v42  ;;  %v40_v47 = vld [vmem:[%s1098_s2 + $0x18] sm:$0xff]  ;;  %v243_v49 = vld [vmem:[%s1101_s5 + $0x68] sm:$0xff]  ;;  %v33_v52 = vld [vmem:[%s1096_s0] sm:$0xff] }
  0x18   :  { %738 = vmatprep.subr.bf16.mxu1 %v737_v34  ;;  %v36_v50 = vld [vmem:[%s1097_s1 + $0x8] sm:$0xff]  ;;  %v697_v51 = vpack.c.bf16 %v40_v47, %v39_v46  ;;  %v41_v53 = vld [vmem:[%s1098_s2 + $0x20] sm:$0xff]  ;;  %v749_v55 = vpack.c.bf16 %v243_v49, %v242_v48  ;;  %v43_v57 = vld [vmem:[%s1098_s2 + $0x30] sm:$0xff] }
  0x19   :  { %684 = vmatpush3.bf16.msra.mxu0 %v681_v26  ;;  %v42_v54 = vld [vmem:[%s1098_s2 + $0x28] sm:$0xff]  ;;  %v44_v58 = vld [vmem:[%s1098_s2 + $0x38] sm:$0xff]  ;;  %v45_v60 = vld [vmem:[%s1098_s2 + $0x40] sm:$0xff] }
  0x1a   :  { %686 = vmatprep.subr.bf16.mxu0 %v685_v32  ;;  %v701_v56 = vpack.c.bf16 %v42_v54, %v41_v53  ;;  %v705_v59 = vpack.c.bf16 %v44_v58, %v43_v57  ;;  %v46_v61 = vld [vmem:[%s1098_s2 + $0x48] sm:$0xff]  ;;  %v47_v63 = vld [vmem:[%s1098_s2 + $0x50] sm:$0xff]  ;;  %v48_v0 = vld [vmem:[%s1098_s2 + $0x58] sm:$0xff] }
  0x1b   :  { %740 = vmatpush3.bf16.msra.mxu1 %v737_v34  ;;  %v709_v62 = vpack.c.bf16 %v46_v61, %v45_v60  ;;  %v713_v1 = vpack.c.bf16 %v48_v0, %v47_v63  ;;  %v49_v2 = vld [vmem:[%s1098_s2 + $0x60] sm:$0xff]  ;;  %v50_v3 = vld [vmem:[%s1098_s2 + $0x68] sm:$0xff]  ;;  %v51_v5 = vld [vmem:[%s1098_s2 + $0x70] sm:$0xff] }
  0x1c   :  { %742 = vmatprep.subr.bf16.mxu1 %v741_v40  ;;  %v717_v4 = vpack.c.bf16 %v50_v3, %v49_v2  ;;  %v52_v6 = vld [vmem:[%s1098_s2 + $0x78] sm:$0xff]  ;;  %v34_v8 = vld [vmem:[%s1096_s0 + $0x8] sm:$0xff]  ;;  %v244_v9 = vld [vmem:[%s1101_s5 + $0x70] sm:$0xff] }
  0x1d   :  { %688 = vmatpush3.bf16.msra.mxu0 %v685_v32  ;;  %v721_v7 = vpack.c.bf16 %v52_v6, %v51_v5  ;;  %v245_v10 = vld [vmem:[%s1101_s5 + $0x78] sm:$0xff]  ;;  %v330_v12 = vld [vmem:[%s1103_s7] sm:$0xff]  ;;  %v331_v13 = vld [vmem:[%s1103_s7 + $0x8] sm:$0xff] }
  0x1e   :  { %690 = vmatprep.subr.bf16.mxu0 %v689_v38  ;;  %v753_v11 = vpack.c.bf16 %v245_v10, %v244_v9  ;;  %v757_v14 = vpack.c.bf16 %v331_v13, %v330_v12  ;;  %v446_v15 = vld [vmem:[%s1100_s4] ss:$0 sm:$0xff]  ;;  %v332_v20 = vld [vmem:[%s1103_s7 + $0x10] sm:$0xff]  ;;  %v333_v21 = vld [vmem:[%s1103_s7 + $0x18] sm:$0xff] }
  0x1f   :  { %744 = vmatpush3.bf16.msra.mxu1 %v741_v40  ;;  %v761_v24 = vpack.c.bf16 %v333_v21, %v332_v20  ;;  %v334_v25 = vld [vmem:[%s1103_s7 + $0x20] sm:$0xff]  ;;  %v335_v26 = vld [vmem:[%s1103_s7 + $0x28] sm:$0xff]  ;;  %v336_v28 = vld [vmem:[%s1103_s7 + $0x30] sm:$0xff] }
  0x20   :  { %746 = vmatprep.subr.bf16.mxu1 %v745_v45  ;;  %v765_v27 = vpack.c.bf16 %v335_v26, %v334_v25  ;;  %v337_v29 = vld [vmem:[%s1103_s7 + $0x38] sm:$0xff]  ;;  %v338_v31 = vld [vmem:[%s1103_s7 + $0x40] sm:$0xff]  ;;  %v339_v32 = vld [vmem:[%s1103_s7 + $0x48] sm:$0xff] }
  0x21   :  { %692 = vmatpush3.bf16.msra.mxu0 %v689_v38  ;;  %v769_v30 = vpack.c.bf16 %v337_v29, %v336_v28  ;;  %v773_v33 = vpack.c.bf16 %v339_v32, %v338_v31  ;;  %v340_v34 = vld [vmem:[%s1103_s7 + $0x50] sm:$0xff]  ;;  %v341_v35 = vld [vmem:[%s1103_s7 + $0x58] sm:$0xff]  ;;  %v342_v37 = vld [vmem:[%s1103_s7 + $0x60] sm:$0xff] }
  0x22   :  { %694 = vmatprep.subr.bf16.mxu0 %v693_v44  ;;  %v777_v36 = vpack.c.bf16 %v341_v35, %v340_v34  ;;  %v343_v38 = vld [vmem:[%s1103_s7 + $0x68] sm:$0xff]  ;;  %v344_v40 = vld [vmem:[%s1103_s7 + $0x70] sm:$0xff]  ;;  %v345_v41 = vld [vmem:[%s1103_s7 + $0x78] sm:$0xff]  ;;  %s818_s7 = smov [#allocation2]  }
  0x23   :  { %748 = vmatpush3.bf16.msra.mxu1 %v745_v45  ;;  %v781_v39 = vpack.c.bf16 %v343_v38, %v342_v37  ;;  %v785_v42 = vpack.c.bf16 %v345_v41, %v344_v40  ;;  %v447_v43 = vld [vmem:[%s1102_s6] ss:$0 sm:$0xff]  ;;  %s435_s11 = sshll.u32 %s818_s7, 4  ;;  %s436_s11 = int_to_ptr.vmem [resolvable:$true] %s435_s11 }
  0x24   :  { %554 = vmatmul.mubr.f32.vlgmr.msra.gmra.mrb[0].mxu0 %v36_v50  ;;  %750 = vmatprep.subr.bf16.mxu1 %v749_v55  ;;  %v448_v50 = vld [vmem:[%s1104_s8] ss:$0 sm:$0xff]  ;;  %s794_s6 = scalar_lea.vmem %s436_s11, 256  ;;  %p799_p1 = scmp.lt.s32.totalorder %s436_s11, %s436_s11 }
  0x25   :  { %696 = vmatpush3.bf16.msra.mxu0 %v693_v44  ;;  %588 = vmatprep.mubr.f32.mxu0 %v33_v52  ;;  %p795_p0 = scmp.ne.s32.totalorder %s436_s11, %s794_s6  ;;  %p800_p2 = scmp.lt.s32.totalorder %s794_s6, %s794_s6 }
  0x26   :  { %698 = vmatprep.subr.bf16.mxu0 %v697_v51 }
  0x27   :  { %752 = vmatpush3.bf16.msra.mxu1 %v749_v55  ;;  %p801_p3 = por %p800_p2, %p799_p1 }
  0x28   :  { %754 = vmatprep.subr.bf16.mxu1 %v753_v11 }
  0x29   :  { %700 = vmatpush3.bf16.msra.mxu0 %v697_v51  ;;  %p802_p4 = pnand %p801_p3, %p795_p0 }
  0x2a   :  { %702 = vmatprep.subr.bf16.mxu0 %v701_v56 }
  0x2b   :  { %756 = vmatpush3.bf16.msra.mxu1 %v753_v11 }
  0x2c   :  { %758 = vmatprep.subr.bf16.mxu1 %v757_v14 }
  0x2d   :  { %704 = vmatpush3.bf16.msra.mxu0 %v701_v56 }
  0x2e   :  { %706 = vmatprep.subr.bf16.mxu0 %v705_v59 }
  0x31   :  { %708 = vmatpush3.bf16.msra.mxu0 %v705_v59 }
  0x32   :  { %710 = vmatprep.subr.bf16.mxu0 %v709_v62 }
  0x35   :  { %712 = vmatpush3.bf16.msra.mxu0 %v709_v62 }
  0x36   :  { %714 = vmatprep.subr.bf16.mxu0 %v713_v1 }
  0x39   :  { %716 = vmatpush3.bf16.msra.mxu0 %v713_v1 }
  0x3a   :  { %718 = vmatprep.subr.bf16.mxu0 %v717_v4 }
  0x3d   :  { %720 = vmatpush3.bf16.msra.mxu0 %v717_v4 }
  0x3e   :  { %722 = vmatprep.subr.bf16.mxu0 %v721_v7 }
  0x41   :  { %724 = vmatpush3.bf16.msra.mxu0 %v721_v7 }
  0x44   :  { %589 = vmatmul.mubr.f32.vlgmr.msra.gmra.mrb[0].mxu0 %v34_v8 }
 0x117   :  { %v590_v16 = vpop.f32.mrb[0].mxu0 }
 0x118   :  { %v227_v17 = vadd.f32 %v590_v16, %v446_v15  ;;  %v210_v18 = vpop.f32.mrb[1].mxu0 }
 0x119   :  { %v226_v19 = vadd.f32 %v446_v15, %v210_v18 }
 0x11a   :  { %v229_v23 = vmax.f32 %v227_v17, 0.0 }
 0x11b   :  { %v228_v22 = vmax.f32 %v226_v19, 0.0 }
 0x11d   :  { %623 = vmatprep.mubr.f32.mxu1 %v228_v22 }
 0x11e   :  { %624 = vmatmul.mubr.f32.vlgmr.msra.gmra.mrb[0].mxu1 %v229_v23 }
 0x11f   :  { %760 = vmatpush3.bf16.msra.mxu1 %v757_v14 }
 0x120   :  { %762 = vmatprep.subr.bf16.mxu1 %v761_v24 }
 0x123   :  { %764 = vmatpush3.bf16.msra.mxu1 %v761_v24 }
 0x124   :  { %766 = vmatprep.subr.bf16.mxu1 %v765_v27 }
 0x127   :  { %768 = vmatpush3.bf16.msra.mxu1 %v765_v27 }
 0x128   :  { %770 = vmatprep.subr.bf16.mxu1 %v769_v30 }
 0x12b   :  { %772 = vmatpush3.bf16.msra.mxu1 %v769_v30 }
 0x12c   :  { %774 = vmatprep.subr.bf16.mxu1 %v773_v33 }
 0x12f   :  { %776 = vmatpush3.bf16.msra.mxu1 %v773_v33 }
 0x130   :  { %778 = vmatprep.subr.bf16.mxu1 %v777_v36 }
 0x133   :  { %780 = vmatpush3.bf16.msra.mxu1 %v777_v36 }
 0x134   :  { %782 = vmatprep.subr.bf16.mxu1 %v781_v39 }
 0x137   :  { %784 = vmatpush3.bf16.msra.mxu1 %v781_v39 }
 0x138   :  { %786 = vmatprep.subr.bf16.mxu1 %v785_v42 }
 0x13b   :  { %788 = vmatpush3.bf16.msra.mxu1 %v785_v42 }
 0x1f1   :  { %v625_v44 = vpop.f32.mrb[0].mxu1 }
 0x1f2   :  { %v325_v45 = vadd.f32 %v625_v44, %v447_v43  ;;  %v319_v46 = vpop.f32.mrb[1].mxu1 }
 0x1f3   :  { %v320_v47 = vadd.f32 %v447_v43, %v319_v46 }
 0x1f4   :  { %v329_v49 = vmax.f32 %v325_v45, 0.0 }
 0x1f5   :  { %v328_v48 = vmax.f32 %v320_v47, 0.0 }
 0x1f7   :  { %658 = vmatprep.mubr.f32.mxu1 %v328_v48 }
 0x1f8   :  { %659 = vmatmul.mubr.f32.vlgmr.msra.gmra.mrb[2].mxu1 %v329_v49 }
 0x2cb   :  { %v660_v51 = vpop.f32.mrb[2].mxu1 }
 0x2cc   :  { %v425_v52 = vadd.f32 %v660_v51, %v448_v50  ;;  %v419_v53 = vpop.f32.mrb[3].mxu1 }
 0x2cd   :  { %v420_v54 = vadd.f32 %v448_v50, %v419_v53 }
 0x2ce   :  { %429 = vst [vmem:[#allocation2 + $0x8] sm:$0xff] %v425_v52 }
 0x2cf   :  { %428 = vst [vmem:[#allocation2] sm:$0xff] %v420_v54 }
 0x2d0   :  { %805 = shalt.err (!%p802_p4)
}
 0x2d1   :  { %s806_s8 = scalar_lea.hbm %s1105_s9, 256 }
 0x2d2   :  { %p807_p5 = scmp.ne.s32.totalorder %s1105_s9, %s806_s8  ;;  %p810_p6 = scmp.lt.u32.totalorder %s806_s8, %s1105_s9 }
 0x2d4   :  { %p812_p7 = pnand %p810_p6, %p807_p5 }
 0x2d6   :  { %815 = shalt.err (!%p812_p7)
}
 0x2d7   :  { %s819_s17 = smov 128   ;;  %s820_s18 = smov 8  }
 0x2d8   :  { %441 = dma.vmem_to_hbm [thread:$0]  %s436_s11, 256, %s1105_s9, [#allocation3], %s819_s17, %s819_s17, %s820_s18  }
 0x2d9   :  { %816 = dma.done.wait [#allocation3], 256  }
 0x2da   :  { %817 = vsyncadd [#allocation3], 4294967040 }
 0x2db   :  { %445 = vsyncpa [#allocation3], 1 }

</bundles_post_ra>
